<compile_context>
chip_gen: v5e
topology: v5e:2x2
jax: 0.10.0
libtpu: 0.0.40
codegen_flags: <defaults>
</compile_context>

<pallas_src>
import functools

import numpy as np
import jax
import jax.numpy as jnp
from jax import lax
from jax.experimental import pallas as pl
from jax.experimental.pallas import tpu as pltpu


def _dct_matrix(n: int) -> np.ndarray:
    """Orthonormal DCT-II matrix: y = D @ x  <=>  scipy dct(x, norm='ortho')."""
    k = np.arange(n)[:, None].astype(np.float64)
    m = np.arange(n)[None, :].astype(np.float64)
    d = np.cos(np.pi * (m + 0.5) * k / n)
    d[0, :] *= np.sqrt(1.0 / n)
    d[1:, :] *= np.sqrt(2.0 / n)
    return d.astype(np.float32)


def _dct_blur_kernel(x_ref, ah_ref, bw_ref, o_ref, *, channels_per_block, img_h):
    """One grid step = cb channels of one batch element (stacked into cb*H rows)."""
    cb, H = channels_per_block, img_h
    W = x_ref.shape[-1]
    cdt = ah_ref.dtype                                   # compute dtype (bf16 or f32)

    x = x_ref[0].astype(cdt)                             # (cb*H, W)
    ah = ah_ref[0]                                       # (H, H), symmetric
    bw = bw_ref[0]                                       # (W, W), symmetric

    # Right multiply for ALL channels at once: one (cb*H, W) @ (W, W) matmul.
    z = jnp.dot(x, bw, preferred_element_type=jnp.float32)           # (cb*H, W) f32

    # Left multiply, batched over channels; A_h symmetric -> no transposes.
    z3 = z.reshape(cb, H, W).astype(cdt)
    ah_b = jnp.broadcast_to(ah[None], (cb, H, H))        # hoisted once per grid step
    y = lax.dot_general(
        ah_b, z3,
        dimension_numbers=(((2,), (1,)), ((0,), (0,))),
        preferred_element_type=jnp.float32)                           # (cb, H, W) f32

    # Single wide store of the whole block.
    o_ref[0] = y.reshape(cb * H, W).astype(o_ref.dtype)


def _pick_channel_block(B, C, H, W, itemsize, budget_bytes=4 << 20):
    """Largest channel block (divisor of C) whose lane-padded VMEM block fits the
    budget, preferring a choice that leaves >= 2 grid steps (v7x has 2 TCs)."""
    lane_w = max(W, 128)                                  # lane padding in VMEM
    divisors = [d for d in range(C, 0, -1) if C % d == 0]
    fitting = [d for d in divisors if d * H * lane_w * itemsize <= budget_bytes] or [1]
    for d in fitting:
        if B * (C // d) >= 2:
            return d
    return fitting[0]


def dct_blur_forward(x, tau, dct_h, dct_w, freqs_ver_sq, freqs_hor_sq,
                     compute_dtype=jnp.bfloat16):
    """x: (B, C, H, W) f32, tau: (B,) f32 -> (B, C, H, W) f32."""
    B, C, H, W = x.shape

    # ---- Tiny per-batch precursor (amortized over all C channels) ------------------
    ev = jnp.exp(-freqs_ver_sq[None, :] * tau[:, None])              # (B, H)
    eh = jnp.exp(-freqs_hor_sq[None, :] * tau[:, None])              # (B, W)
    a_h = jnp.einsum('ki,bk,kj->bij', dct_h, ev, dct_h).astype(compute_dtype)  # (B,H,H)
    b_w = jnp.einsum('ki,bk,kj->bij', dct_w, eh, dct_w).astype(compute_dtype)  # (B,W,W)

    # Present all channels of a batch as one tall (C*H, W) operand (free reshape).
    x3 = x.reshape(B, C * H, W)
    cb = _pick_channel_block(B, C, H, W, x.dtype.itemsize)
    grid = (B, C // cb)

    kernel = functools.partial(_dct_blur_kernel, channels_per_block=cb, img_h=H)

    flops = 2 * B * C * H * W * (H + W)                   # two matmuls per plane
    bytes_accessed = (2 * x.size * x.dtype.itemsize
                      + (a_h.size + b_w.size) * a_h.dtype.itemsize)

    # VMEM budget: double-buffered in/out blocks (lane-padded) + resident A/B matrices.
    lane_w = max(W, 128)
    block_bytes = cb * H * lane_w * x.dtype.itemsize
    mats_bytes = (H * max(H, 128) + W * lane_w) * a_h.dtype.itemsize
    vmem_need = 4 * block_bytes + 2 * mats_bytes + (2 << 20)
    compiler_kwargs = dict(dimension_semantics=("parallel", "parallel"))
    if vmem_need > (12 << 20):                            # only raise when actually needed
        compiler_kwargs["vmem_limit_bytes"] = int(min(vmem_need * 5 // 4, 60 << 20))

    out3 = pl.pallas_call(
        kernel,
        out_shape=jax.ShapeDtypeStruct((B, C * H, W), x.dtype),
        grid_spec=pltpu.PrefetchScalarGridSpec(
            num_scalar_prefetch=0,
            grid=grid,
            in_specs=[
                pl.BlockSpec((1, cb * H, W), lambda b, j: (b, j, 0)),
                pl.BlockSpec((1, H, H), lambda b, j: (b, 0, 0)),
                pl.BlockSpec((1, W, W), lambda b, j: (b, 0, 0)),
            ],
            out_specs=pl.BlockSpec((1, cb * H, W), lambda b, j: (b, j, 0)),
        ),
        compiler_params=pltpu.CompilerParams(**compiler_kwargs),
        cost_estimate=pl.CostEstimate(flops=flops, transcendentals=0,
                                      bytes_accessed=bytes_accessed),
    )(x3, a_h, b_w)
    return out3.reshape(B, C, H, W)


class DCTBlurPallas:
    """JAX/Pallas port of the DCTBlur forward pass (deterministic init)."""

    def __init__(self, img_width, img_height, noise_steps,
                 compute_dtype=jnp.bfloat16):
        self.noise_steps = noise_steps
        self.compute_dtype = compute_dtype
        freqs_hor = np.pi * np.arange(img_width, dtype=np.float32) / img_width
        freqs_ver = np.pi * np.arange(img_height, dtype=np.float32) / img_height
        self.freqs_hor_sq = jnp.asarray(freqs_hor ** 2, dtype=jnp.float32)
        self.freqs_ver_sq = jnp.asarray(freqs_ver ** 2, dtype=jnp.float32)
        self.frequencies_squared = jnp.asarray(
            freqs_hor[None, :] ** 2 + freqs_ver[:, None] ** 2, dtype=jnp.float32)
        self.dct_h = jnp.asarray(_dct_matrix(img_height))
        self.dct_w = jnp.asarray(_dct_matrix(img_width))
        self.blur_schedule = None

    def prepare_blur_schedule(self, blur_sigma_max, blur_sigma_min):
        sched = np.exp(np.linspace(np.log(blur_sigma_min),
                                   np.log(blur_sigma_max), self.noise_steps))
        self.blur_schedule = jnp.asarray(
            np.array([0.0] + list(sched)), dtype=jnp.float32)

    def sample_timesteps(self, key, n):
        return jax.random.randint(key, (n,), minval=1, maxval=self.noise_steps)

    def __call__(self, x, t):
        sigmas = self.blur_schedule[t]                    # (B,)
        tau = (sigmas ** 2 / 2.0).astype(jnp.float32)     # (B,)
        return dct_blur_forward(x, tau, self.dct_h, self.dct_w,
                                self.freqs_ver_sq, self.freqs_hor_sq,
                                compute_dtype=self.compute_dtype)


if __name__ == "__main__":
    B, C, H, W = 2, 4, 16, 16
    noise_steps = 10

    key = jax.random.PRNGKey(0)
    kx, kt = jax.random.split(key)
    x = jax.random.normal(kx, (B, C, H, W), dtype=jnp.float32)
    t = jax.random.randint(kt, (B,), minval=1, maxval=noise_steps)

    blur = DCTBlurPallas(img_width=W, img_height=H, noise_steps=noise_steps)
    blur.prepare_blur_schedule(blur_sigma_max=20.0, blur_sigma_min=0.5)

    out = jax.block_until_ready(blur(x, t))               # bf16 fast path (default)

    # Pure-JAX reference of the original (4-matmul + mask) formulation.
    dh, dw = blur.dct_h, blur.dct_w
    tau_b = (blur.blur_schedule[t] ** 2 / 2.0).astype(jnp.float32)
    tau4 = tau_b[:, None, None, None]
    coefs = jnp.einsum("hk,bckw->bchw", dh, jnp.einsum("bchw,wk->bchk", x, dw.T))
    coefs = coefs * jnp.exp(-blur.frequencies_squared[None, None] * tau4)
    ref = jnp.einsum("hk,bckw->bchw", dh.T, jnp.einsum("bchw,wk->bchk", coefs, dw))

    # Exactness check of the separable-rewrite kernel with f32 operands.
    out_f32 = jax.block_until_ready(
        dct_blur_forward(x, tau_b, blur.dct_h, blur.dct_w,
                         blur.freqs_ver_sq, blur.freqs_hor_sq,
                         compute_dtype=jnp.float32))
    assert jnp.max(jnp.abs(out_f32 - ref)) < 2e-4, "f32 kernel mismatch vs reference"

    # Sanity check of the bf16-operand / f32-accumulate fast path.
    rel = jnp.sqrt(jnp.sum((out - ref) ** 2) / (jnp.sum(ref ** 2) + 1e-12))
    assert rel < 3e-2, "bf16 kernel relative error too large"

    print("KERNEL_OK")
</pallas_src>

<mosaic_0001>
module attributes {stable_mosaic.version = 11 : i64} {
  func.func @_dct_blur_kernel(%arg0: i32, %arg1: i32, %arg2: memref<1x64x16xf32, #tpu.memory_space<vmem>>, %arg3: memref<1x16x16xbf16, #tpu.memory_space<vmem>>, %arg4: memref<1x16x16xbf16, #tpu.memory_space<vmem>>, %arg5: memref<1x64x16xf32, #tpu.memory_space<vmem>>) attributes {dimension_semantics = [#tpu.dimension_semantics<parallel>, #tpu.dimension_semantics<parallel>], iteration_bounds = array<i64: 2, 1>, scalar_prefetch = 0 : i64, scratch_operands = 0 : i64, tpu.core_type = #tpu.core_type<tc>, window_params = [{transform_indices = @transform_0, window_bounds = array<i64: 1, 64, 16>}, {transform_indices = @transform_1, window_bounds = array<i64: 1, 16, 16>}, {transform_indices = @transform_2, window_bounds = array<i64: 1, 16, 16>}, {transform_indices = @transform_3, window_bounds = array<i64: 1, 64, 16>}]} {
    %c0 = arith.constant 0 : index
    %c0_0 = arith.constant 0 : index
    %c0_1 = arith.constant 0 : index
    %0 = vector.load %arg2[%c0, %c0_0, %c0_1] : memref<1x64x16xf32, #tpu.memory_space<vmem>>, vector<1x64x16xf32>
    %1 = vector.shape_cast %0 : vector<1x64x16xf32> to vector<64x16xf32>
    %2 = arith.truncf %1 : vector<64x16xf32> to vector<64x16xbf16>
    %c0_2 = arith.constant 0 : index
    %c0_3 = arith.constant 0 : index
    %c0_4 = arith.constant 0 : index
    %3 = vector.load %arg3[%c0_2, %c0_3, %c0_4] : memref<1x16x16xbf16, #tpu.memory_space<vmem>>, vector<1x16x16xbf16>
    %4 = vector.shape_cast %3 : vector<1x16x16xbf16> to vector<16x16xbf16>
    %c0_5 = arith.constant 0 : index
    %c0_6 = arith.constant 0 : index
    %c0_7 = arith.constant 0 : index
    %5 = vector.load %arg4[%c0_5, %c0_6, %c0_7] : memref<1x16x16xbf16, #tpu.memory_space<vmem>>, vector<1x16x16xbf16>
    %6 = vector.shape_cast %5 : vector<1x16x16xbf16> to vector<16x16xbf16>
    %cst = arith.constant dense<0.000000e+00> : vector<64x16xf32>
    %7 = tpu.matmul %2, %6, %cst {dimension_numbers = #tpu.dot_dimension_numbers<[1], [0], [0], [1], [0, 0, 1, 1], [], []>} : vector<64x16xbf16>, vector<16x16xbf16>, vector<64x16xf32> -> vector<64x16xf32>
    %8 = vector.shape_cast %7 : vector<64x16xf32> to vector<4x16x16xf32>
    %9 = arith.truncf %8 : vector<4x16x16xf32> to vector<4x16x16xbf16>
    %10 = vector.shape_cast %4 : vector<16x16xbf16> to vector<1x16x16xbf16>
    %11 = vector.shape_cast %10 : vector<1x16x16xbf16> to vector<1x16x16xbf16>
    %12 = vector.broadcast %11 : vector<1x16x16xbf16> to vector<4x16x16xbf16>
    %cst_8 = arith.constant dense<0.000000e+00> : vector<4x16x16xf32>
    %13 = tpu.matmul %12, %9, %cst_8 {dimension_numbers = #tpu.dot_dimension_numbers<[2], [1], [1], [2], [0, 0, 0, 1, 1, 2], [0], [0]>} : vector<4x16x16xbf16>, vector<4x16x16xbf16>, vector<4x16x16xf32> -> vector<4x16x16xf32>
    %14 = vector.shape_cast %13 : vector<4x16x16xf32> to vector<64x16xf32>
    %c0_9 = arith.constant 0 : index
    %c0_10 = arith.constant 0 : index
    %c0_11 = arith.constant 0 : index
    %15 = vector.load %arg5[%c0_9, %c0_10, %c0_11] : memref<1x64x16xf32, #tpu.memory_space<vmem>>, vector<1x64x16xf32>
    %16 = vector.shape_cast %15 : vector<1x64x16xf32> to vector<64x16xf32>
    %17 = vector.shape_cast %14 : vector<64x16xf32> to vector<1x64x16xf32>
    tpu.vector_store %arg5[%c0_9, %c0_10, %c0_11], %17 {strides = array<i32>} : memref<1x64x16xf32, #tpu.memory_space<vmem>>, vector<1x64x16xf32>,
    return
  }
  func.func @transform_0(%arg0: i32, %arg1: i32) -> (i32, i32, i32) {
    %c0_i32 = arith.constant 0 : i32
    %c0_i32_0 = arith.constant 0 : i32
    return %arg0, %arg1, %c0_i32 : i32, i32, i32
  }
  func.func @transform_1(%arg0: i32, %arg1: i32) -> (i32, i32, i32) {
    %c0_i32 = arith.constant 0 : i32
    %c0_i32_0 = arith.constant 0 : i32
    %c0_i32_1 = arith.constant 0 : i32
    return %arg0, %c0_i32, %c0_i32_0 : i32, i32, i32
  }
  func.func @transform_2(%arg0: i32, %arg1: i32) -> (i32, i32, i32) {
    %c0_i32 = arith.constant 0 : i32
    %c0_i32_0 = arith.constant 0 : i32
    %c0_i32_1 = arith.constant 0 : i32
    return %arg0, %c0_i32, %c0_i32_0 : i32, i32, i32
  }
  func.func @transform_3(%arg0: i32, %arg1: i32) -> (i32, i32, i32) {
    %c0_i32 = arith.constant 0 : i32
    %c0_i32_0 = arith.constant 0 : i32
    return %arg0, %arg1, %c0_i32 : i32, i32, i32
  }
}

</mosaic_0001>

<bundles_post_ra>
// kernel: tpu_custom_call.1
= control target key start
LH: loop header
LB: loop body
LE: loop exit
PB: predicated region body
PF: predicated region fallthrough
CT: control target
= control target key end

     0   :  { %s637_s12 = smov 0   ;;  %s639_s13 = smov 0   ;;  %s704_s0 = inlined_call_operand.vmem [shape: f32[2,64,16], index: 0, kind: input, shape index: {}]   ;;  %s705_s1 = inlined_call_operand.vmem [shape: bf16[2,16,16], index: 1, kind: input, shape index: {}]   ;;  %s706_s2 = inlined_call_operand.vmem [shape: bf16[2,16,16], index: 2, kind: input, shape index: {}]   ;;  %s707_s3 = inlined_call_operand.vmem [shape: f32[2,64,16], index: 3, kind: output, shape index: {}]  }
   0x1   :  { %s641_s14 = smov 0  }
   0x2 LB: > { %s25_s15 = sadd.s32 1, %s611_s13  ;;  %p534_p0 = scmp.ge.s32.totalorder %s615_s14, 1  ;;  %s615_s14 = sphi %s641_s14, %s13_s14   ;;  %s611_s13 = sphi %s639_s13, %s709_s13   ;;  %s607_s12 = sphi %s637_s12, %s708_s12  }
   0x3   : > { %p27_p1 = scmp.ge.s32.totalorder %s25_s15, 2  ;;  %p178_p2 = scmp.lt.s32.totalorder %s615_s14, 3 }
   0x5   : > { %s711_s15 = smov (%p27_p1, %s25_s15), 0  ;;  %p179_p3 = pnand %p534_p0, %p178_p2 }
   0x6   : > { %p221_p4 = scmp.lt.s32.totalorder (!%p179_p3), %s607_s12, 1 }
   0x7   : > { %182 = sbr.rel (%p179_p3) target bundleno = 321 (0x141), region = 32 }
   0xc   : > { %s713_s12 = smov (!%p221_p4, %s607_s12), 1  ;;  %vm273_vm0 = vcmask 130048  }
   0xd   : > { %s561_s16 = sshll.u32 %s713_s12, 6  ;;  %s562_s17 = sshll.u32 %s713_s12, 3 }
   0xe   : > { %s228_s20 = scalar_lea.vmem %s704_s0, %s561_s16  ;;  %s239_s23 = scalar_lea.vmem %s706_s2, %s562_s17 }
   0xf   : > { %v251_v0 = vld [vmem:[%s228_s20] sm:$0xff]  ;;  %v252_v1 = vld [vmem:[%s228_s20 + $0x8] sm:$0xff]  ;;  %v257_v5 = vld [vmem:[%s228_s20 + $0x30] sm:$0xff]  ;;  %s234_s26 = scalar_lea.vmem %s705_s1, %s562_s17  ;;  %s248_s29 = scalar_lea.vmem %s707_s3, %s561_s16 }
  0x10   : > { %v255_v2 = vld [vmem:[%s228_s20 + $0x20] sm:$0xff]  ;;  %v256_v4 = vld [vmem:[%s228_s20 + $0x28] sm:$0xff]  ;;  %v259_v6 = vpack.c.bf16 %v252_v1, %v251_v0  ;;  %v258_v8 = vld [vmem:[%s228_s20 + $0x38] sm:$0xff] }
  0x11   : > { %v566_v3 = vld [vmem:[%s239_s23] sm:$0xff]  ;;  %v261_v7 = vpack.c.bf16 %v256_v4, %v255_v2  ;;  %v262_v9 = vpack.c.bf16 %v258_v8, %v257_v5  ;;  %v253_v10 = vld [vmem:[%s228_s20 + $0x10] sm:$0xff]  ;;  %v254_v11 = vld [vmem:[%s228_s20 + $0x18] sm:$0xff] }
  0x12   : > { %293 = vmatpush.bf16.msra.mxu0 %v566_v3  ;;  %567 = vmatpush.bf16.msra.mxu2 %v566_v3  ;;  %v260_v12 = vpack.c.bf16 %v254_v11, %v253_v10  ;;  %v565_v25 = vld [vmem:[%s234_s26] sm:$0xff] }
  0x13   : > { %568 = vmatpush.bf16.msra.mxu3 %v566_v3 }
  0x15   : > { %547 = vmatmul.msk.bf16.vlgmr.msra.gmra.mxu0 %vm273_vm0, %v259_v6  ;;  %549 = vmatmul.msk.bf16.vlgmr.msra.gmra.mxu2 %vm273_vm0, %v261_v7 }
  0x16   : > { %550 = vmatmul.msk.bf16.vlgmr.msra.gmra.mxu3 %vm273_vm0, %v262_v9 }
  0x25   : > { %548 = vmatmul.msk.bf16.gmra.mxu0 %vm273_vm0, %v260_v12 }
  0x92   : > { %v295_v13 = vpop.f32.mrf.mxu0 }
  0x93   : > { %v315_v15 = vpack.c.bf16 %v295_v13, %v295_v13 }
  0x95   : > { %v330_v19 = vunpack.c.l.b16 %v315_v15 }
  0x98   : > { %v305_v14 = vpop.f32.mrf.mxu2 }
  0x99   : > { %v310_v16 = vpop.f32.mrf.mxu3  ;;  %v319_v21 = vpack.c.bf16 %v305_v14, %v305_v14 }
  0x9a   : > { %v297_v17 = vpop.f32.mrf.mxu0  ;;  %v321_v22 = vpack.c.bf16 %v310_v16, %v310_v16 }
  0x9b   : > { %v316_v18 = vpack.c.bf16 %v297_v17, %v297_v17  ;;  %v373_v26 = vunpack.c.l.b16 %v319_v21 }
  0x9c   : > { %v393_v29 = vunpack.c.l.b16 %v321_v22 }
  0x9d   : > { %v331_v20 = vunpack.c.l.b16 %v316_v18 }
  0x9f   : > { %v332_v23 = vpack.c.b16 %v331_v20, %v330_v19 }
  0xa0   : > { %v307_v24 = vpop.f32.mrf.mxu2 }
  0xa1   : > { %344 = vmatpush.bf16.msra.mxu1 %v332_v23  ;;  %v320_v27 = vpack.c.bf16 %v307_v24, %v307_v24  ;;  %v312_v28 = vpop.f32.mrf.mxu3 }
  0xa2   : > { %v300_v30 = vpop.f32.mrf.mxu0  ;;  %v322_v31 = vpack.c.bf16 %v312_v28, %v312_v28 }
  0xa3   : > { %v374_v32 = vunpack.c.l.b16 %v320_v27  ;;  %v317_v36 = vpack.c.bf16 %v300_v30, %v300_v30 }
  0xa4   : > { %v394_v33 = vunpack.c.l.b16 %v322_v31  ;;  %555 = vmatmul.msk.bf16.vlgmr.msra.gmra.mxu1 %vm273_vm0, %v565_v25 }
  0xa5   : > { %v375_v34 = vpack.c.b16 %v374_v32, %v373_v26  ;;  %v353_v39 = vunpack.c.l.b16 %v317_v36 }
  0xa6   : > { %v395_v35 = vpack.c.b16 %v394_v33, %v393_v29 }
  0xa7   : > { %384 = vmatpush.bf16.msrb.mxu3 %v375_v34 }
  0xa8   : > { %404 = vmatpush.bf16.msrb.mxu1 %v395_v35 }
  0xaa   : > { %v302_v37 = vpop.f32.mrf.mxu0  ;;  %557 = vmatmul.msk.bf16.vlgmr.msrb.gmra.mxu3 %vm273_vm0, %v565_v25 }
  0xab   : > { %v318_v38 = vpack.c.bf16 %v302_v37, %v302_v37 }
  0xad   : > { %v354_v40 = vunpack.c.l.b16 %v318_v38 }
  0xaf   : > { %v355_v41 = vpack.c.b16 %v354_v40, %v353_v39 }
  0xb1   : > { %364 = vmatpush.bf16.msrb.mxu2 %v355_v41 }
  0xb4   : > { %556 = vmatmul.msk.bf16.vlgmr.msrb.gmra.mxu2 %vm273_vm0, %v565_v25  ;;  %558 = vmatmul.msk.bf16.vlgmr.msrb.gmra.mxu1 %vm273_vm0, %v565_v25 }
 0x121   : > { %v346_v42 = vpop.f32.mrf.mxu1 }
 0x122   : > { %411 = vst.msk [vmem:[%s248_s29] sm:$0xff] %vm273_vm0, %v346_v42 }
 0x129   : > { %v348_v43 = vpop.f32.mrf.mxu1 }
 0x12a   : > { %412 = vst.msk [vmem:[%s248_s29 + $0x8] sm:$0xff] %vm273_vm0, %v348_v43 }
 0x12d   : > { %v386_v44 = vpop.f32.mrf.mxu3 }
 0x12e   : > { %415 = vst.msk [vmem:[%s248_s29 + $0x20] sm:$0xff] %vm273_vm0, %v386_v44 }
 0x131   : > { %v406_v45 = vpop.f32.mrf.mxu1 }
 0x132   : > { %417 = vst.msk [vmem:[%s248_s29 + $0x30] sm:$0xff] %vm273_vm0, %v406_v45 }
 0x135   : > { %v388_v46 = vpop.f32.mrf.mxu3 }
 0x136   : > { %416 = vst.msk [vmem:[%s248_s29 + $0x28] sm:$0xff] %vm273_vm0, %v388_v46 }
 0x137   : > { %v366_v47 = vpop.f32.mrf.mxu2 }
 0x138   : > { %413 = vst.msk [vmem:[%s248_s29 + $0x10] sm:$0xff] %vm273_vm0, %v366_v47 }
 0x139   : > { %v408_v48 = vpop.f32.mrf.mxu1 }
 0x13a   : > { %418 = vst.msk [vmem:[%s248_s29 + $0x38] sm:$0xff] %vm273_vm0, %v408_v48 }
 0x13f   : > { %v368_v49 = vpop.f32.mrf.mxu2 }
 0x140   : > { %414 = vst.msk [vmem:[%s248_s29 + $0x18] sm:$0xff] %vm273_vm0, %v368_v49 }
 0x141 PF: > { %s13_s14 = sadd.s32 1, %s615_s14   ;;  %s708_s12 = smov %s611_s13 }
 0x142   : > { %p10_p5 = scmp.ge.s32.totalorder %s13_s14, 4   ;;  %s709_s13 = smov %s711_s15 }
 0x144   :  { %12 = sbr.rel (!%p10_p5) target bundleno = 2 (0x2), region = 68 }

</bundles_post_ra>
